<compile_context>
chip_gen: v7x
topology: tpu7x:2x2x1
jax: 0.10.0
libtpu: 0.0.40
codegen_flags: <defaults>
</compile_context>

<pallas_src>
import jax
import jax.numpy as jnp
import numpy as np
from jax.experimental import pallas as pl
from jax.experimental.pallas import tpu as pltpu


def fm_kernel(x_ref, r_ref, s_ref, b_ref, o_ref):
    """One batch tile of the FM forward pass.

    x_ref: (TB, p)    input rows (native dtype, fed straight to the MXU)
    r_ref: (p, k+1)   [v | w^T]  (factor matrix with linear weight folded in)
    s_ref: (p, 1)     rowsum(v*v) column, in x's dtype (RHS of the 2nd dot)
    b_ref: (1, 1)     linear bias (SMEM scalar)
    o_ref: (1, TB)    lane-dense output row for this tile
    """
    k = r_ref.shape[1] - 1
    x = x_ref[...]

    # Main MXU pass: computes x @ v and the linear term x @ w^T together.
    xr = jnp.dot(x, r_ref[...], preferred_element_type=jnp.float32)    # (TB, k+1)
    xv = xr[:, :k]                                                      # (TB, k)
    linear = xr[:, k:k + 1]                                             # (TB, 1)

    # sum_k (x @ v)^2
    inter1 = jnp.sum(xv * xv, axis=1, keepdims=True)                    # (TB, 1)
    # sum_k (x^2 @ v^2) == (x*x) @ rowsum(v*v): second small MXU dot; square in
    # native dtype, accumulate in f32 (no (TB, p) f32 temp on the VPU path).
    inter2 = jnp.dot(x * x, s_ref[...],
                     preferred_element_type=jnp.float32)                # (TB, 1)

    # Dropout(0.5) on the pair term is identity in eval mode.
    out_col = linear + b_ref[0, 0] + 0.5 * (inter1 - inter2)            # (TB, 1)

    # Lane-dense store: one XLU relayout (otherwise-free slot) instead of a
    # (TB, 1) column of masked 1-lane stores.
    o_ref[...] = jnp.transpose(out_col).astype(o_ref.dtype)             # (1, TB)


def _round_up(n, m):
    return (n + m - 1) // m * m


def _vmem_budget_bytes():
    """Generation-aware VMEM limit: ~48 MiB on v7x (64 MiB/TC), ~96 MiB on
    v5e/v6e (128 MiB). Conservative 48 MiB fallback if the query fails."""
    try:
        phys = getattr(pltpu.get_tpu_info(), "vmem_capacity_bytes", None)
    except Exception:
        phys = None
    if not phys:
        phys = 64 << 20
    return int(min(phys * 3 // 4, 96 << 20))


def _choose_tile_b(p, k, itemsize, vmem_limit):
    """Largest batch tile whose pipeline footprint (lane-padded, double-buffered
    x, live f32 temps, resident weights) fits ~50% of the VMEM limit.
    Multiple of 128 (lane-dense output blocks), capped at 8192 rows."""
    p_pad = _round_up(p, 128)            # Mosaic pads the last dim to 128 lanes
    kp1_pad = _round_up(k + 1, 128)
    per_row = (2 * p_pad * itemsize      # double-buffered x tile
               + p_pad * itemsize        # x*x temp (native dtype)
               + 2 * p_pad * 4           # headroom for f32 live temps / spills
               + 2 * kp1_pad * 4         # xr result + xv*xv temp
               + 4 * 4)                  # output row blocks
    fixed = (2 * _round_up(p, 8) * (kp1_pad + 128) * itemsize  # r and s buffers
             + (1 << 20))                                      # misc scratch
    budget = vmem_limit // 2
    tb = (budget - fixed) // per_row
    tb = max(128, min(int(tb), 8192))
    return (tb // 128) * 128


def factorization_machine(x, v, w, b):
    """x: (B, p), v: (p, k), w: (1, p) (torch Linear weight), b: (1,) -> (B, 1).

    NOTE: streams x / weights in their given dtype; feed bf16 inputs to halve
    HBM traffic if the accuracy budget permits (accumulation stays f32).
    """
    B, p = x.shape
    k = v.shape[1]
    itemsize = jnp.dtype(x.dtype).itemsize

    vmem_limit = _vmem_budget_bytes()
    tb = _choose_tile_b(p, k, itemsize, vmem_limit)

    if B <= 256:
        tile_b = _round_up(B, 8)          # tiny batch: one sublane-aligned tile
    else:
        # >= 2 tiles so the "parallel" axis feeds both v7x TensorCores and the
        # pipeline always has a next block to prefetch.
        tile_b = max(128, min(tb, _round_up(pl.cdiv(B, 2), 128)))
    num_tiles = pl.cdiv(B, tile_b)
    # Only the tiny f32 output is padded; x itself is NOT copied/padded -- the
    # last x block overhangs, and its garbage rows land in output lanes >= B
    # which are sliced away below.
    b_pad = num_tiles * tile_b

    # Wrapper-side O(p*k) precompute / layout plumbing:
    r = jnp.concatenate([v, w.reshape(p, 1)], axis=1).astype(x.dtype)    # (p, k+1)
    s = jnp.sum(v.astype(jnp.float32) ** 2, axis=1, keepdims=True)       # (p, 1)
    s = s.astype(x.dtype)
    b_sc = b.reshape(1, 1).astype(jnp.float32)

    cost = pl.CostEstimate(
        flops=2 * B * p * (k + 2) + 6 * B * (k + 1),
        bytes_accessed=(B * p + p * (k + 2)) * itemsize + 4 * b_pad + 4,
        transcendentals=0,
    )

    out_row = pl.pallas_call(
        fm_kernel,
        out_shape=jax.ShapeDtypeStruct((1, b_pad), jnp.float32),
        grid_spec=pltpu.PrefetchScalarGridSpec(
            num_scalar_prefetch=0,
            grid=(num_tiles,),
            in_specs=[
                pl.BlockSpec((tile_b, p), lambda i: (i, 0)),          # x batch tile
                pl.BlockSpec((p, k + 1), lambda i: (0, 0)),           # [v | w^T] (resident)
                pl.BlockSpec((p, 1), lambda i: (0, 0)),               # rowsum(v^2) (resident)
                pl.BlockSpec(memory_space=pltpu.MemorySpace.SMEM),    # bias scalar
            ],
            out_specs=pl.BlockSpec((1, tile_b), lambda i: (0, i)),    # lane-dense row
        ),
        compiler_params=pltpu.CompilerParams(
            dimension_semantics=("parallel",),   # shard batch tiles across TCs
            vmem_limit_bytes=vmem_limit,
        ),
        cost_estimate=cost,
    )(x, r, s, b_sc)

    return out_row.reshape(b_pad, 1)[:B]


if __name__ == "__main__":
    # Small shapes consistent with the module: batch=8, p=32 features, k=8 factors.
    B, P, K = 8, 32, 8
    key = jax.random.PRNGKey(0)
    kx, kv, kw, kb = jax.random.split(key, 4)

    # Deterministic init mirroring the torch module:
    #   v = torch.rand(p, k) / 10 ; nn.Linear(p, 1): U(-1/sqrt(p), 1/sqrt(p))
    x = jax.random.normal(kx, (B, P), dtype=jnp.float32)
    v = jax.random.uniform(kv, (P, K), dtype=jnp.float32) / 10.0
    bound = float(1.0 / np.sqrt(P))
    w = jax.random.uniform(kw, (1, P), dtype=jnp.float32, minval=-bound, maxval=bound)
    b = jax.random.uniform(kb, (1,), dtype=jnp.float32, minval=-bound, maxval=bound)

    out = jax.block_until_ready(factorization_machine(x, v, w, b))

    # Exact float64 reference on host (avoids TPU default-matmul-precision
    # ambiguity of a jnp reference); tolerance covers the kernel's f32 MXU math.
    xn, vn = np.asarray(x, np.float64), np.asarray(v, np.float64)
    wn, bn = np.asarray(w, np.float64), np.asarray(b, np.float64)
    ref = (xn @ wn.T + bn.reshape(1, 1)
           + 0.5 * np.sum((xn @ vn) ** 2 - (xn ** 2) @ (vn ** 2),
                          axis=1, keepdims=True))

    assert out.shape == (B, 1), out.shape
    err = np.max(np.abs(np.asarray(out, np.float64) - ref))
    assert np.allclose(np.asarray(out, np.float64), ref, atol=5e-3, rtol=5e-3), err
    print("KERNEL_OK")
</pallas_src>

<mosaic_0001>
module attributes {stable_mosaic.version = 11 : i64} {
  func.func @fm_kernel(%arg0: i32, %arg1: memref<8x32xf32, #tpu.memory_space<vmem>>, %arg2: memref<32x9xf32, #tpu.memory_space<vmem>>, %arg3: memref<32x1xf32, #tpu.memory_space<vmem>>, %arg4: memref<1x1xf32, #tpu.memory_space<smem>>, %arg5: memref<1x8xf32, #tpu.memory_space<vmem>>) attributes {dimension_semantics = [#tpu.dimension_semantics<parallel>], iteration_bounds = array<i64: 1>, scalar_prefetch = 0 : i64, scratch_operands = 0 : i64, tpu.core_type = #tpu.core_type<tc>, window_params = [{transform_indices = @transform_0, window_bounds = array<i64: 8, 32>}, {pipeline_mode = #tpu.pipeline_mode<synchronous>, transform_indices = @transform_1, window_bounds = array<i64: 32, 9>}, {pipeline_mode = #tpu.pipeline_mode<synchronous>, transform_indices = @transform_2, window_bounds = array<i64: 32, 1>}, {transform_indices = @transform_3, window_bounds = array<i64: 1, 1>}, {transform_indices = @transform_4, window_bounds = array<i64: 1, 8>}]} {
    %c0 = arith.constant 0 : index
    %c0_0 = arith.constant 0 : index
    %0 = vector.load %arg1[%c0, %c0_0] : memref<8x32xf32, #tpu.memory_space<vmem>>, vector<8x32xf32>
    %c0_1 = arith.constant 0 : index
    %c0_2 = arith.constant 0 : index
    %1 = vector.load %arg2[%c0_1, %c0_2] : memref<32x9xf32, #tpu.memory_space<vmem>>, vector<32x9xf32>
    %cst = arith.constant dense<0.000000e+00> : vector<8x9xf32>
    %2 = tpu.matmul %0, %1, %cst {dimension_numbers = #tpu.dot_dimension_numbers<[1], [0], [0], [1], [0, 0, 1, 1], [], []>} : vector<8x32xf32>, vector<32x9xf32>, vector<8x9xf32> -> vector<8x9xf32>
    %3 = vector.extract_strided_slice %2 {offsets = [0, 0], sizes = [8, 8], strides = [1, 1]} : vector<8x9xf32> to vector<8x8xf32>
    %4 = vector.extract_strided_slice %2 {offsets = [0, 8], sizes = [8, 1], strides = [1, 1]} : vector<8x9xf32> to vector<8x1xf32>
    %5 = arith.mulf %3, %3 : vector<8x8xf32>
    %cst_3 = arith.constant dense<0.000000e+00> : vector<8xf32>
    %6 = vector.multi_reduction <add>, %5, %cst_3 [1] : vector<8x8xf32> to vector<8xf32>
    %7 = vector.shape_cast %6 : vector<8xf32> to vector<8x1xf32>
    %8 = arith.mulf %0, %0 : vector<8x32xf32>
    %c0_4 = arith.constant 0 : index
    %c0_5 = arith.constant 0 : index
    %9 = vector.load %arg3[%c0_4, %c0_5] : memref<32x1xf32, #tpu.memory_space<vmem>>, vector<32x1xf32>
    %cst_6 = arith.constant dense<0.000000e+00> : vector<8x1xf32>
    %10 = tpu.matmul %8, %9, %cst_6 {dimension_numbers = #tpu.dot_dimension_numbers<[1], [0], [0], [1], [0, 0, 1, 1], [], []>} : vector<8x32xf32>, vector<32x1xf32>, vector<8x1xf32> -> vector<8x1xf32>
    %c0_7 = arith.constant 0 : index
    %c0_8 = arith.constant 0 : index
    %11 = memref.load %arg4[%c0_7, %c0_8] : memref<1x1xf32, #tpu.memory_space<smem>>
    %12 = vector.broadcast %11 : f32 to vector<8x1xf32>
    %13 = arith.addf %4, %12 : vector<8x1xf32>
    %14 = arith.subf %7, %10 : vector<8x1xf32>
    %cst_9 = arith.constant 5.000000e-01 : f32
    %15 = vector.broadcast %cst_9 : f32 to vector<8x1xf32>
    %16 = arith.mulf %15, %14 : vector<8x1xf32>
    %17 = arith.addf %13, %16 : vector<8x1xf32>
    %18 = tpu.transpose %17, [1, 0] : vector<8x1xf32> -> vector<1x8xf32>
    %c0_10 = arith.constant 0 : index
    %c0_11 = arith.constant 0 : index
    %19 = vector.load %arg5[%c0_10, %c0_11] : memref<1x8xf32, #tpu.memory_space<vmem>>, vector<1x8xf32>
    tpu.vector_store %arg5[%c0_10, %c0_11], %18 {strides = array<i32>} : memref<1x8xf32, #tpu.memory_space<vmem>>, vector<1x8xf32>,
    return
  }
  func.func @transform_0(%arg0: i32) -> (i32, i32) {
    %c0_i32 = arith.constant 0 : i32
    %c0_i32_0 = arith.constant 0 : i32
    return %arg0, %c0_i32 : i32, i32
  }
  func.func @transform_1(%arg0: i32) -> (i32, i32) {
    %c0_i32 = arith.constant 0 : i32
    %c0_i32_0 = arith.constant 0 : i32
    %c0_i32_1 = arith.constant 0 : i32
    return %c0_i32, %c0_i32_0 : i32, i32
  }
  func.func @transform_2(%arg0: i32) -> (i32, i32) {
    %c0_i32 = arith.constant 0 : i32
    %c0_i32_0 = arith.constant 0 : i32
    %c0_i32_1 = arith.constant 0 : i32
    return %c0_i32, %c0_i32_0 : i32, i32
  }
  func.func @transform_3(%arg0: i32) -> (i32, i32) {
    %c0_i32 = arith.constant 0 : i32
    %c0_i32_0 = arith.constant 0 : i32
    %c0_i32_1 = arith.constant 0 : i32
    return %c0_i32, %c0_i32_0 : i32, i32
  }
  func.func @transform_4(%arg0: i32) -> (i32, i32) {
    %c0_i32 = arith.constant 0 : i32
    %c0_i32_0 = arith.constant 0 : i32
    return %c0_i32, %arg0 : i32, i32
  }
}

</mosaic_0001>

<bundles_post_ra>
// kernel: tpu_custom_call.1
= control target key start
LH: loop header
LB: loop body
LE: loop exit
PB: predicated region body
PF: predicated region fallthrough
CT: control target
= control target key end

     0   :  { %v319_v3 = vmov 0.0|0.0   ;;  %vm320_vm0 = vmmov 0   ;;  %v321_v6 = vmov 0.0   ;;  %s392_s0 = inlined_call_operand.vmem [shape: f32[8,32], index: 0, kind: input, shape index: {}]   ;;  %s393_s1 = inlined_call_operand.vmem [shape: f32[32,9], index: 1, kind: input, shape index: {}]   ;;  %s394_s2 = inlined_call_operand.vmem [shape: f32[32,1], index: 2, kind: input, shape index: {}]   ;;  %s395_s3 = inlined_call_operand.<no memory space> [shape: f32[1,1], index: 3, kind: input, shape index: {}]   ;;  %s396_s4 = inlined_call_operand.hbm [shape: f32[1,8], index: 4, kind: output, shape index: {}]  }
   0x1   :  { %v20_v0 = vld [vmem:[%s393_s1] sm:$0xff]  ;;  %v21_v1 = vld [vmem:[%s393_s1 + $0x8] sm:$0xff]  ;;  %v22_v2 = vld [vmem:[%s393_s1 + $0x10] sm:$0xff]  ;;  %277 = vmatprep.subr.bf16.mxu0 %v319_v3  ;;  %263 = vmatprep.mubr.msk.f32.mxu0 %vm320_vm0, %v321_v6 }
   0x2   :  { %v278_v4 = vpack.c.bf16 %v21_v1, %v20_v0  ;;  %v23_v5 = vld [vmem:[%s393_s1 + $0x18] sm:$0xff]  ;;  %v104_v7 = vld [vmem:[%s394_s2] sm:$0xff]  ;;  %283 = vmatprep.subr.bf16.mxu1 %v319_v3  ;;  %v105_v8 = vld [vmem:[%s394_s2 + $0x8] sm:$0xff]  ;;  %274 = vmatprep.mubr.msk.f32.mxu1 %vm320_vm0, %v321_v6 }
   0x3   :  { %v106_v9 = vld [vmem:[%s394_s2 + $0x10] sm:$0xff]  ;;  %v107_v10 = vld [vmem:[%s394_s2 + $0x18] sm:$0xff]  ;;  %v281_v11 = vpack.c.bf16 %v23_v5, %v22_v2  ;;  %v284_v12 = vpack.c.bf16 %v105_v8, %v104_v7 }
   0x4   :  { %279 = vmatpush3.bf16.msra.mxu0 %v278_v4 }
   0x5   :  { %10 = vsyncpa [#allocation4], 0  ;;  %280 = vmatprep.subr.bf16.mxu0 %v319_v3  ;;  %285 = vmatpush3.bf16.msra.mxu1 %v284_v12  ;;  %v287_v13 = vpack.c.bf16 %v107_v10, %v106_v9  ;;  %v19_v14 = vld [vmem:[%s392_s0] sm:$0xff]  ;;  %vm24_vm1 = vcmask 261120   ;;  %vm99_vm2 = vcmask 64512   ;;  %s322_s2 = smov 8   ;;  %v182_v25 = vstv %s395_s3 }
   0x6   :  { %286 = vmatprep.subr.bf16.mxu1 %v319_v3  ;;  %v103_v15 = vmul.f32 %v19_v14, %v19_v14  ;;  %s323_s7 = smov 120   ;;  %s324_s8 = smov [#allocation3]   ;;  %vm227_vm3 = vcmask 57344  }
   0x7   :  { %s235_s9 = sshll.u32 %s324_s8, 4  ;;  %s236_s9 = int_to_ptr.vmem [resolvable:$true] %s235_s9 }
   0x8   :  { %282 = vmatpush3.bf16.msra.mxu0 %v281_v11  ;;  %s295_s10 = scalar_lea.vmem %s236_s9, 16  ;;  %s299_s11 = scalar_lea.vmem %s236_s9, 32 }
   0x9   :  { %288 = vmatpush3.bf16.msra.mxu1 %v287_v13  ;;  %p296_p0 = scmp.ne.s32.totalorder %s236_s9, %s295_s10  ;;  %p300_p1 = scmp.lt.s32.totalorder %s236_s9, %s236_s9 }
   0xa   :  { %p301_p2 = scmp.lt.s32.totalorder %s299_s11, %s295_s10 }
   0xb   :  { %264 = vmatmul.mubr.msk.f32.vlgmr.msra.gmra.mrb[0].mxu0 %vm24_vm1, %v19_v14 }
   0xc   :  { %275 = vmatmul.mubr.msk.f32.vlgmr.msra.gmra.mrb[0].mxu1 %vm24_vm1, %v103_v15  ;;  %p302_p3 = por %p301_p2, %p300_p1 }
   0xe   :  { %p303_p4 = pnand %p302_p3, %p296_p0 }
  0xde   :  { %v94_v16 = vpop.f32.mrb[0].mxu0 }
  0xdf   :  { %v265_v17 = vpop.f32.mrb[1].mxu0  ;;  %v98_v18 = vmul.f32 %v94_v16, %v94_v16  ;;  %v177_v19 = vpop.f32.mrb[0].mxu1  ;;  %v183_v26 = vadd.f32 %v182_v25, %v94_v16 }
  0xe0   :  { %v276_v21 = vpop.f32.mrb[1].mxu1 }
  0xe1   :  { %v100_v20 = vsel %vm99_vm2, %v98_v18, 0.0 }
  0xe2   :  { %101 = vadd.xlane.f32.xlu0 %v100_v20 }
 0x16f   :  { %v102_v22 = vpop.xlane.xlu0 %101 }
 0x170   :  { %v184_v23 = vsub.f32 %v102_v22, %v177_v19 }
 0x172   :  { %v185_v24 = vmul.f32 0.5, %v184_v23 }
 0x174   :  { %187 = vrot.lane.b32.xlu0 %v185_v24, %s322_s2 }
 0x1e6   :  { %v188_v27 = vpop.permute.xlu0 %187 }
 0x1e7   :  { %v190_v28 = vadd.f32 %v188_v27, %v183_v26 }
 0x1e9   :  { %192 = vrot.lane.b32.xlu1 %v190_v28, %s323_s7 }
 0x25b   :  { %v193_v29 = vpop.permute.xlu1 %192 }
 0x25c   :  { %195 = vxpose.xlu1.b32.start.end [1/1] (short) (narrow) %v193_v29, 8 }
 0x2dc   :  { %v211_v30 = vpop.trf.xlu1 }
 0x2dd   :  { %228 = vst.msk [vmem:[#allocation3] sm:$0x1] %vm227_vm3, %v211_v30 }
 0x2de   :  { %306 = shalt.err (!%p303_p4)
}
 0x2df   :  { %s307_s13 = scalar_lea.hbm %s396_s4, 16 }
 0x2e0   :  { %p308_p5 = scmp.ne.s32.totalorder %s396_s4, %s307_s13  ;;  %p311_p6 = scmp.lt.u32.totalorder %s307_s13, %s396_s4 }
 0x2e2   :  { %p313_p7 = pnand %p311_p6, %p308_p5 }
 0x2e4   :  { %316 = shalt.err (!%p313_p7)
}
 0x2e5   :  { %238 = dma.vmem_to_hbm [thread:$0]  %s236_s9, 16, %s396_s4, [#allocation4]  }
 0x2e6   :  { %317 = dma.done.wait [#allocation4], 16  }
 0x2e7   :  { %318 = vsyncadd [#allocation4], 4294967280 }
 0x2e8   :  { %242 = vsyncpa [#allocation4], 1 }

</bundles_post_ra>
